<compile_context>
chip_gen: v6e
topology: v6e:2x2x1
jax: 0.10.0
libtpu: 0.0.40
codegen_flags: <defaults>
</compile_context>

<pallas_src>
import math
import functools

import jax
import jax.numpy as jnp
from jax.experimental import pallas as pl
from jax.experimental.pallas import tpu as pltpu


def expert0_kernel(x_ref, w1_ref, b1_ref, w2_ref, b2_ref, out_ref):
    """Fused forward for one batch tile.

    x_ref   : (3, tb, D)   first three "L" steps of the input, batch tile
    w1_ref  : (3, D, Hp)   fc1 weight, reshaped so w1_ref[l] = W1[l*D:(l+1)*D, :]
    b1_ref  : (1, Hp)      fc1 bias (zero-padded to Hp)
    w2_ref  : (Hp, Cp)     fc2 weight (zero-padded)
    b2_ref  : (1, Cp)      fc2 bias (zero-padded)
    out_ref : (tb, Cp)     output tile (lane-dense, Cp multiple of 128)
    """
    # fc1 on the flattened [x_0 | x_1 | x_2] input, expressed as a split-K
    # accumulation over the three L steps (all MXU work, f32 accumulation).
    h = jnp.dot(x_ref[0], w1_ref[0], preferred_element_type=jnp.float32)
    h = h + jnp.dot(x_ref[1], w1_ref[1], preferred_element_type=jnp.float32)
    h = h + jnp.dot(x_ref[2], w1_ref[2], preferred_element_type=jnp.float32)
    # Bias + ReLU.  Padded hidden columns stay exactly 0 (zero weight cols,
    # zero bias), so they contribute nothing to fc2.
    h = jnp.maximum(h + b1_ref[...], 0.0)
    # fc2
    o = jnp.dot(h, w2_ref[...], preferred_element_type=jnp.float32)
    o = o + b2_ref[...]
    out_ref[...] = o.astype(out_ref.dtype)


def _round_up(x, m):
    return pl.cdiv(x, m) * m


def prepare_expert0_params(w1, b1, w2, b2):
    """One-time layout prep: pad H/C to lane-dense multiples of 128 and
    reshape W1 into its per-L-step (3, D, Hp) split-K form."""
    D_in, H = w1.shape
    assert D_in % 3 == 0, "fc1 expects 3 * input_dim features"
    D = D_in // 3
    C = w2.shape[1]

    Hp = int(_round_up(H, 128))
    Cp = int(_round_up(C, 128))

    w1p = jnp.pad(w1, ((0, 0), (0, Hp - H))).reshape(3, D, Hp)
    b1p = jnp.pad(b1.reshape(1, H), ((0, 0), (0, Hp - H)))
    w2p = jnp.pad(w2, ((0, Hp - H), (0, Cp - C)))
    b2p = jnp.pad(b2.reshape(1, C), ((0, 0), (0, Cp - C)))
    return (w1p, b1p, w2p, b2p), (D, H, C, Hp, Cp)


@functools.partial(jax.jit, static_argnames=("tile_b",))
def expert0_forward(inp, w1, b1, w2, b2, *, tile_b=None):
    """inp: (L, B, D) with L >= 3 -> (B, C) output.

    w1: (3*D, H)  b1: (H,)  w2: (H, C)  b2: (C,)   (module uses H == C == D)
    """
    L, B, D_in_arr = inp.shape
    assert L >= 3, "expert0 consumes the first three L steps"

    (w1p, b1p, w2p, b2p), (D, H, C, Hp, Cp) = prepare_expert0_params(
        w1, b1, w2, b2
    )
    assert D == D_in_arr, "fc1 in_features must equal 3 * input feature dim"

    # One big batch tile for small B; cap at 512 rows so a tile (plus double
    # buffering of the x / out tiles) stays far under the v7x 64 MiB VMEM
    # budget and large B yields multiple parallel grid steps.
    if tile_b is None:
        tile_b = min(int(_round_up(B, 8)), 512)
    tile_b = int(_round_up(tile_b, 8))
    Bp = int(_round_up(B, tile_b))

    x3 = inp[:3]  # (3, B, D)
    if Bp != B:
        x3 = jnp.pad(x3, ((0, 0), (0, Bp - B), (0, 0)))

    grid = (Bp // tile_b,)
    out = pl.pallas_call(
        expert0_kernel,
        out_shape=jax.ShapeDtypeStruct((Bp, Cp), inp.dtype),
        grid_spec=pltpu.PrefetchScalarGridSpec(
            num_scalar_prefetch=0,
            grid=grid,
            in_specs=[
                pl.BlockSpec((3, tile_b, D), lambda i: (0, i, 0)),  # x tile
                pl.BlockSpec((3, D, Hp), lambda i: (0, 0, 0)),      # W1 (resident)
                pl.BlockSpec((1, Hp), lambda i: (0, 0)),            # b1
                pl.BlockSpec((Hp, Cp), lambda i: (0, 0)),           # W2 (resident)
                pl.BlockSpec((1, Cp), lambda i: (0, 0)),            # b2
            ],
            out_specs=pl.BlockSpec((tile_b, Cp), lambda i: (i, 0)),
        ),
        compiler_params=pltpu.CompilerParams(
            dimension_semantics=("parallel",),
        ),
    )(x3, w1p, b1p, w2p, b2p)

    # Strip batch / lane padding.
    return out[:B, :C]


def init_expert0_params(key, input_num, input_dim, dtype=jnp.float32):
    """PyTorch nn.Linear-style uniform(-1/sqrt(fan_in), 1/sqrt(fan_in)) init."""
    d_in = input_dim * input_num
    k1, k2, k3, k4 = jax.random.split(key, 4)

    bound1 = 1.0 / math.sqrt(d_in)
    # Stored as [in, out] (transpose of torch's [out, in]).
    w1 = jax.random.uniform(k1, (d_in, input_dim), dtype, -bound1, bound1)
    b1 = jax.random.uniform(k2, (input_dim,), dtype, -bound1, bound1)

    bound2 = 1.0 / math.sqrt(input_dim)
    w2 = jax.random.uniform(k3, (input_dim, input_dim), dtype, -bound2, bound2)
    b2 = jax.random.uniform(k4, (input_dim,), dtype, -bound2, bound2)
    return w1, b1, w2, b2


def expert0_ref(inp, w1, b1, w2, b2):
    """Pure-JAX reference matching the PyTorch forward."""
    x = jnp.transpose(inp[:3], (1, 0, 2))          # 'LBD->BLD'
    x = x.reshape(x.shape[0], -1)                  # flatten(1)
    h = jnp.maximum(x @ w1 + b1, 0.0)              # fc1 + ReLU
    return h @ w2 + b2                             # fc2


if __name__ == "__main__":
    input_num = 3
    input_dim = 32

    key = jax.random.PRNGKey(0)
    k_x1, k_x2, k_p = jax.random.split(key, 3)
    w1, b1, w2, b2 = init_expert0_params(k_p, input_num, input_dim)

    # Case 1: small batch not a multiple of 8 (exercises batch padding path).
    L, B, D = 3, 6, input_dim
    inp = jax.random.normal(k_x1, (L, B, D), jnp.float32)
    out = jax.block_until_ready(expert0_forward(inp, w1, b1, w2, b2))
    ref = expert0_ref(inp, w1, b1, w2, b2)
    assert out.shape == (B, input_dim), out.shape
    assert jnp.allclose(out, ref, atol=1e-5, rtol=1e-5), "mismatch (case 1)"

    # Case 2: larger batch with an explicit tile -> multiple pipelined grid
    # steps (also exercises the non-divisible batch + multi-tile path).
    B2 = 133
    inp2 = jax.random.normal(k_x2, (L, B2, D), jnp.float32)
    out2 = jax.block_until_ready(
        expert0_forward(inp2, w1, b1, w2, b2, tile_b=64)
    )
    ref2 = expert0_ref(inp2, w1, b1, w2, b2)
    assert out2.shape == (B2, input_dim), out2.shape
    assert jnp.allclose(out2, ref2, atol=1e-5, rtol=1e-5), "mismatch (case 2)"

    print("KERNEL_OK")
</pallas_src>

<mosaic_0001>
module attributes {stable_mosaic.version = 11 : i64} {
  func.func @expert0_kernel(%arg0: i32, %arg1: memref<3x8x32xf32, #tpu.memory_space<vmem>>, %arg2: memref<3x32x128xf32, #tpu.memory_space<vmem>>, %arg3: memref<1x128xf32, #tpu.memory_space<vmem>>, %arg4: memref<128x128xf32, #tpu.memory_space<vmem>>, %arg5: memref<1x128xf32, #tpu.memory_space<vmem>>, %arg6: memref<8x128xf32, #tpu.memory_space<vmem>>) attributes {dimension_semantics = [#tpu.dimension_semantics<parallel>], iteration_bounds = array<i64: 1>, scalar_prefetch = 0 : i64, scratch_operands = 0 : i64, tpu.core_type = #tpu.core_type<tc>, window_params = [{transform_indices = @transform_0, window_bounds = array<i64: 3, 8, 32>}, {pipeline_mode = #tpu.pipeline_mode<synchronous>, transform_indices = @transform_1, window_bounds = array<i64: 3, 32, 128>}, {pipeline_mode = #tpu.pipeline_mode<synchronous>, transform_indices = @transform_2, window_bounds = array<i64: 1, 128>}, {pipeline_mode = #tpu.pipeline_mode<synchronous>, transform_indices = @transform_3, window_bounds = array<i64: 128, 128>}, {pipeline_mode = #tpu.pipeline_mode<synchronous>, transform_indices = @transform_4, window_bounds = array<i64: 1, 128>}, {transform_indices = @transform_5, window_bounds = array<i64: 8, 128>}]} {
    %c0 = arith.constant 0 : index
    %c0_0 = arith.constant 0 : index
    %c0_1 = arith.constant 0 : index
    %0 = vector.load %arg1[%c0, %c0_0, %c0_1] : memref<3x8x32xf32, #tpu.memory_space<vmem>>, vector<1x8x32xf32>
    %1 = vector.shape_cast %0 : vector<1x8x32xf32> to vector<8x32xf32>
    %c0_2 = arith.constant 0 : index
    %c0_3 = arith.constant 0 : index
    %c0_4 = arith.constant 0 : index
    %2 = vector.load %arg2[%c0_2, %c0_3, %c0_4] : memref<3x32x128xf32, #tpu.memory_space<vmem>>, vector<1x32x128xf32>
    %3 = vector.shape_cast %2 : vector<1x32x128xf32> to vector<32x128xf32>
    %cst = arith.constant dense<0.000000e+00> : vector<8x128xf32>
    %4 = tpu.matmul %1, %3, %cst {dimension_numbers = #tpu.dot_dimension_numbers<[1], [0], [0], [1], [0, 0, 1, 1], [], []>} : vector<8x32xf32>, vector<32x128xf32>, vector<8x128xf32> -> vector<8x128xf32>
    %c1 = arith.constant 1 : index
    %c0_5 = arith.constant 0 : index
    %c0_6 = arith.constant 0 : index
    %5 = vector.load %arg1[%c1, %c0_5, %c0_6] : memref<3x8x32xf32, #tpu.memory_space<vmem>>, vector<1x8x32xf32>
    %6 = vector.shape_cast %5 : vector<1x8x32xf32> to vector<8x32xf32>
    %c1_7 = arith.constant 1 : index
    %c0_8 = arith.constant 0 : index
    %c0_9 = arith.constant 0 : index
    %7 = vector.load %arg2[%c1_7, %c0_8, %c0_9] : memref<3x32x128xf32, #tpu.memory_space<vmem>>, vector<1x32x128xf32>
    %8 = vector.shape_cast %7 : vector<1x32x128xf32> to vector<32x128xf32>
    %cst_10 = arith.constant dense<0.000000e+00> : vector<8x128xf32>
    %9 = tpu.matmul %6, %8, %cst_10 {dimension_numbers = #tpu.dot_dimension_numbers<[1], [0], [0], [1], [0, 0, 1, 1], [], []>} : vector<8x32xf32>, vector<32x128xf32>, vector<8x128xf32> -> vector<8x128xf32>
    %10 = arith.addf %4, %9 : vector<8x128xf32>
    %c2 = arith.constant 2 : index
    %c0_11 = arith.constant 0 : index
    %c0_12 = arith.constant 0 : index
    %11 = vector.load %arg1[%c2, %c0_11, %c0_12] : memref<3x8x32xf32, #tpu.memory_space<vmem>>, vector<1x8x32xf32>
    %12 = vector.shape_cast %11 : vector<1x8x32xf32> to vector<8x32xf32>
    %c2_13 = arith.constant 2 : index
    %c0_14 = arith.constant 0 : index
    %c0_15 = arith.constant 0 : index
    %13 = vector.load %arg2[%c2_13, %c0_14, %c0_15] : memref<3x32x128xf32, #tpu.memory_space<vmem>>, vector<1x32x128xf32>
    %14 = vector.shape_cast %13 : vector<1x32x128xf32> to vector<32x128xf32>
    %cst_16 = arith.constant dense<0.000000e+00> : vector<8x128xf32>
    %15 = tpu.matmul %12, %14, %cst_16 {dimension_numbers = #tpu.dot_dimension_numbers<[1], [0], [0], [1], [0, 0, 1, 1], [], []>} : vector<8x32xf32>, vector<32x128xf32>, vector<8x128xf32> -> vector<8x128xf32>
    %16 = arith.addf %10, %15 : vector<8x128xf32>
    %c0_17 = arith.constant 0 : index
    %c0_18 = arith.constant 0 : index
    %17 = vector.load %arg3[%c0_17, %c0_18] : memref<1x128xf32, #tpu.memory_space<vmem>>, vector<1x128xf32>
    %18 = vector.broadcast %17 : vector<1x128xf32> to vector<8x128xf32>
    %19 = arith.addf %16, %18 : vector<8x128xf32>
    %cst_19 = arith.constant 0.000000e+00 : f32
    %20 = vector.broadcast %cst_19 : f32 to vector<8x128xf32>
    %21 = arith.maximumf %19, %20 : vector<8x128xf32>
    %c0_20 = arith.constant 0 : index
    %c0_21 = arith.constant 0 : index
    %22 = vector.load %arg4[%c0_20, %c0_21] : memref<128x128xf32, #tpu.memory_space<vmem>>, vector<128x128xf32>
    %cst_22 = arith.constant dense<0.000000e+00> : vector<8x128xf32>
    %23 = tpu.matmul %21, %22, %cst_22 {dimension_numbers = #tpu.dot_dimension_numbers<[1], [0], [0], [1], [0, 0, 1, 1], [], []>} : vector<8x128xf32>, vector<128x128xf32>, vector<8x128xf32> -> vector<8x128xf32>
    %c0_23 = arith.constant 0 : index
    %c0_24 = arith.constant 0 : index
    %24 = vector.load %arg5[%c0_23, %c0_24] : memref<1x128xf32, #tpu.memory_space<vmem>>, vector<1x128xf32>
    %25 = vector.broadcast %24 : vector<1x128xf32> to vector<8x128xf32>
    %26 = arith.addf %23, %25 : vector<8x128xf32>
    %c0_25 = arith.constant 0 : index
    %c0_26 = arith.constant 0 : index
    %27 = vector.load %arg6[%c0_25, %c0_26] : memref<8x128xf32, #tpu.memory_space<vmem>>, vector<8x128xf32>
    tpu.vector_store %arg6[%c0_25, %c0_26], %26 {strides = array<i32>} : memref<8x128xf32, #tpu.memory_space<vmem>>, vector<8x128xf32>,
    return
  }
  func.func @transform_0(%arg0: i32) -> (i32, i32, i32) {
    %c0_i32 = arith.constant 0 : i32
    %c0_i32_0 = arith.constant 0 : i32
    %c0_i32_1 = arith.constant 0 : i32
    return %c0_i32, %arg0, %c0_i32_0 : i32, i32, i32
  }
  func.func @transform_1(%arg0: i32) -> (i32, i32, i32) {
    %c0_i32 = arith.constant 0 : i32
    %c0_i32_0 = arith.constant 0 : i32
    %c0_i32_1 = arith.constant 0 : i32
    %c0_i32_2 = arith.constant 0 : i32
    return %c0_i32, %c0_i32_0, %c0_i32_1 : i32, i32, i32
  }
  func.func @transform_2(%arg0: i32) -> (i32, i32) {
    %c0_i32 = arith.constant 0 : i32
    %c0_i32_0 = arith.constant 0 : i32
    %c0_i32_1 = arith.constant 0 : i32
    return %c0_i32, %c0_i32_0 : i32, i32
  }
  func.func @transform_3(%arg0: i32) -> (i32, i32) {
    %c0_i32 = arith.constant 0 : i32
    %c0_i32_0 = arith.constant 0 : i32
    %c0_i32_1 = arith.constant 0 : i32
    return %c0_i32, %c0_i32_0 : i32, i32
  }
  func.func @transform_4(%arg0: i32) -> (i32, i32) {
    %c0_i32 = arith.constant 0 : i32
    %c0_i32_0 = arith.constant 0 : i32
    %c0_i32_1 = arith.constant 0 : i32
    return %c0_i32, %c0_i32_0 : i32, i32
  }
  func.func @transform_5(%arg0: i32) -> (i32, i32) {
    %c0_i32 = arith.constant 0 : i32
    %c0_i32_0 = arith.constant 0 : i32
    return %arg0, %c0_i32 : i32, i32
  }
}

</mosaic_0001>

<bundles_post_ra>
// kernel: expert0_forward.1
= control target key start
LH: loop header
LB: loop body
LE: loop exit
PB: predicated region body
PF: predicated region fallthrough
CT: control target
= control target key end

     0   :  { %v518_v1 = vmov 0.0   ;;  %vm519_vm0 = vmmov 0   ;;  %vm33_vm1 = vcmask 261120   ;;  %s692_s0 = inlined_call_operand.vmem [shape: f32[3,8,32], index: 0, kind: input, shape index: {}]   ;;  %s693_s1 = inlined_call_operand.vmem [shape: f32[3,32,128], index: 1, kind: input, shape index: {}]   ;;  %s694_s2 = inlined_call_operand.vmem [shape: f32[1,128], index: 2, kind: input, shape index: {}]   ;;  %s695_s3 = inlined_call_operand.vmem [shape: f32[128,128], index: 3, kind: input, shape index: {}]   ;;  %s696_s4 = inlined_call_operand.vmem [shape: f32[1,128], index: 4, kind: input, shape index: {}]   ;;  %s697_s5 = inlined_call_operand.hbm [shape: f32[8,128], index: 5, kind: output, shape index: {}]  }
   0x1   :  { %v382_v0 = vld [vmem:[%s693_s1 + $0x38] sm:$0xff]  ;;  %425 = vmatprep.subr.mxu0 %v518_v1  ;;  %v381_v2 = vld [vmem:[%s693_s1 + $0x30] sm:$0xff]  ;;  %433 = vmatprep.mubr.msk.f32.mxu0 %vm519_vm0, %v518_v1  ;;  %v380_v3 = vld [vmem:[%s693_s1 + $0x28] sm:$0xff] }
   0x2   :  { %426 = vmatpush3.msra.mxu0 %v382_v0  ;;  %458 = vmatprep.subr.mxu1 %v518_v1  ;;  %v379_v4 = vld [vmem:[%s693_s1 + $0x20] sm:$0xff]  ;;  %v285_v5 = vld [vmem:[%s695_s3 + $0x78] sm:$0xff]  ;;  %v284_v6 = vld [vmem:[%s695_s3 + $0x70] sm:$0xff] }
   0x3   :  { %427 = vmatprep.subr.mxu0 %v518_v1  ;;  %490 = vmatprep.mubr.msk.f32.mxu1 %vm519_vm0, %v518_v1  ;;  %v378_v7 = vld [vmem:[%s692_s0 + $0x8] sm:$0xff] }
   0x4   :  { %428 = vmatpush3.msra.mxu0 %v381_v2  ;;  %459 = vmatpush3.msra.mxu1 %v285_v5 }
   0x5   :  { %429 = vmatprep.subr.mxu0 %v518_v1 }
   0x6   :  { %430 = vmatpush3.msra.mxu0 %v380_v3 }
   0x7   :  { %10 = vsyncpa [#allocation3], 0  ;;  %431 = vmatprep.subr.mxu0 %v518_v1  ;;  %v25_v8 = vld [vmem:[%s693_s1 + $0x18] sm:$0xff]  ;;  %460 = vmatprep.subr.mxu1 %v518_v1  ;;  %v24_v9 = vld [vmem:[%s693_s1 + $0x10] sm:$0xff] }
   0x8   :  { %432 = vmatpush3.msra.mxu0 %v379_v4  ;;  %461 = vmatpush3.msra.mxu1 %v284_v6  ;;  %v283_v10 = vld [vmem:[%s695_s3 + $0x68] sm:$0xff]  ;;  %v282_v12 = vld [vmem:[%s695_s3 + $0x60] sm:$0xff]  ;;  %v389_v15 = vld [vmem:[%s693_s1 + $0x58] sm:$0xff] }
   0x9   :  { %434 = vmatmul.mubr.msk.f32.vlgmr.msra.gmra.mxu0 %vm33_vm1, %v378_v7  ;;  %436 = vmatprep.subr.mxu0 %v518_v1  ;;  %v23_v11 = vld [vmem:[%s693_s1 + $0x8] sm:$0xff]  ;;  %v22_v13 = vld [vmem:[%s693_s1] sm:$0xff]  ;;  %v388_v16 = vld [vmem:[%s693_s1 + $0x50] sm:$0xff] }
   0xa   :  { %437 = vmatpush3.msra.mxu0 %v25_v8  ;;  %444 = vmatprep.mubr.msk.f32.mxu0 %vm519_vm0, %v518_v1  ;;  %v21_v14 = vld [vmem:[%s692_s0] sm:$0xff]  ;;  %v387_v17 = vld [vmem:[%s693_s1 + $0x48] sm:$0xff]  ;;  %v385_v19 = vld [vmem:[%s692_s0 + $0x10] sm:$0xff] }
   0xb   :  { %438 = vmatprep.subr.mxu0 %v518_v1  ;;  %462 = vmatprep.subr.mxu1 %v518_v1  ;;  %v386_v18 = vld [vmem:[%s693_s1 + $0x40] sm:$0xff]  ;;  %v281_v20 = vld [vmem:[%s695_s3 + $0x58] sm:$0xff]  ;;  %v280_v21 = vld [vmem:[%s695_s3 + $0x50] sm:$0xff] }
   0xc   :  { %439 = vmatpush3.msra.mxu0 %v24_v9  ;;  %463 = vmatpush3.msra.mxu1 %v283_v10  ;;  %v279_v22 = vld [vmem:[%s695_s3 + $0x48] sm:$0xff]  ;;  %v278_v23 = vld [vmem:[%s695_s3 + $0x40] sm:$0xff]  ;;  %v277_v24 = vld [vmem:[%s695_s3 + $0x38] sm:$0xff] }
   0xd   :  { %440 = vmatprep.subr.mxu0 %v518_v1  ;;  %464 = vmatprep.subr.mxu1 %v518_v1  ;;  %v276_v25 = vld [vmem:[%s695_s3 + $0x30] sm:$0xff]  ;;  %v275_v26 = vld [vmem:[%s695_s3 + $0x28] sm:$0xff]  ;;  %v274_v27 = vld [vmem:[%s695_s3 + $0x20] sm:$0xff] }
   0xe   :  { %441 = vmatpush3.msra.mxu0 %v23_v11  ;;  %465 = vmatpush3.msra.mxu1 %v282_v12  ;;  %v273_v28 = vld [vmem:[%s695_s3 + $0x18] sm:$0xff]  ;;  %v272_v29 = vld [vmem:[%s695_s3 + $0x10] sm:$0xff]  ;;  %v271_v30 = vld [vmem:[%s695_s3 + $0x8] sm:$0xff] }
   0xf   :  { %442 = vmatprep.subr.mxu0 %v518_v1  ;;  %466 = vmatprep.subr.mxu1 %v518_v1  ;;  %v270_v31 = vld [vmem:[%s695_s3] sm:$0xff]  ;;  %s520_s3 = smov [#allocation2]  }
  0x10   :  { %443 = vmatpush3.msra.mxu0 %v22_v13  ;;  %467 = vmatpush3.msra.mxu1 %v281_v20  ;;  %v391_v38 = vld [vmem:[%s694_s2] ss:$0 sm:$0xff]  ;;  %s370_s7 = sshll.u32 %s520_s3, 4  ;;  %s371_s7 = int_to_ptr.vmem [resolvable:$true] %s370_s7 }
  0x11   :  { %445 = vmatmul.mubr.msk.f32.vlgmr.msra.gmra.mxu0 %vm33_vm1, %v21_v14  ;;  %447 = vmatprep.subr.mxu0 %v518_v1  ;;  %v392_v43 = vld [vmem:[%s696_s4] ss:$0 sm:$0xff]  ;;  %s496_s8 = scalar_lea.vmem %s371_s7, 128  ;;  %p501_p1 = scmp.lt.s32.totalorder %s371_s7, %s371_s7 }
  0x12   :  { %448 = vmatpush3.msra.mxu0 %v389_v15  ;;  %455 = vmatprep.mubr.msk.f32.mxu0 %vm519_vm0, %v518_v1  ;;  %p497_p0 = scmp.ne.s32.totalorder %s371_s7, %s496_s8  ;;  %p502_p2 = scmp.lt.s32.totalorder %s496_s8, %s496_s8 }
  0x13   :  { %449 = vmatprep.subr.mxu0 %v518_v1  ;;  %468 = vmatprep.subr.mxu1 %v518_v1 }
  0x14   :  { %450 = vmatpush3.msra.mxu0 %v388_v16  ;;  %469 = vmatpush3.msra.mxu1 %v280_v21  ;;  %p503_p3 = por %p502_p2, %p501_p1 }
  0x15   :  { %451 = vmatprep.subr.mxu0 %v518_v1  ;;  %470 = vmatprep.subr.mxu1 %v518_v1 }
  0x16   :  { %452 = vmatpush3.msra.mxu0 %v387_v17  ;;  %471 = vmatpush3.msra.mxu1 %v279_v22  ;;  %p504_p4 = pnand %p503_p3, %p497_p0 }
  0x17   :  { %453 = vmatprep.subr.mxu0 %v518_v1  ;;  %472 = vmatprep.subr.mxu1 %v518_v1 }
  0x18   :  { %454 = vmatpush3.msra.mxu0 %v386_v18  ;;  %473 = vmatpush3.msra.mxu1 %v278_v23 }
  0x19   :  { %456 = vmatmul.mubr.msk.f32.vlgmr.msra.gmra.mxu0 %vm33_vm1, %v385_v19  ;;  %474 = vmatprep.subr.mxu1 %v518_v1 }
  0x1a   :  { %475 = vmatpush3.msra.mxu1 %v277_v24 }
  0x1b   :  { %476 = vmatprep.subr.mxu1 %v518_v1 }
  0x1c   :  { %477 = vmatpush3.msra.mxu1 %v276_v25 }
  0x1d   :  { %478 = vmatprep.subr.mxu1 %v518_v1 }
  0x1e   :  { %479 = vmatpush3.msra.mxu1 %v275_v26 }
  0x1f   :  { %480 = vmatprep.subr.mxu1 %v518_v1 }
  0x20   :  { %481 = vmatpush3.msra.mxu1 %v274_v27 }
  0x21   :  { %482 = vmatprep.subr.mxu1 %v518_v1 }
  0x22   :  { %483 = vmatpush3.msra.mxu1 %v273_v28 }
  0x23   :  { %484 = vmatprep.subr.mxu1 %v518_v1 }
  0x24   :  { %485 = vmatpush3.msra.mxu1 %v272_v29 }
  0x25   :  { %486 = vmatprep.subr.mxu1 %v518_v1 }
  0x26   :  { %487 = vmatpush3.msra.mxu1 %v271_v30 }
  0x27   :  { %488 = vmatprep.subr.mxu1 %v518_v1 }
  0x28   :  { %489 = vmatpush3.msra.mxu1 %v270_v31 }
  0xc9   :  { %v103_v32 = vpop.f32.mrf.mxu0 }
  0xcb   :  { %v435_v33 = vpop.f32.mrf.mxu0 }
  0xd1   :  { %v176_v34 = vpop.f32.mrf.mxu0 }
  0xd2   :  { %v177_v36 = vadd.f32 %v176_v34, %v103_v32 }
  0xd3   :  { %v446_v35 = vpop.f32.mrf.mxu0 }
  0xd9   :  { %v256_v37 = vpop.f32.mrf.mxu0 }
  0xda   :  { %v260_v39 = vadd.f32 %v256_v37, %v177_v36 }
  0xdb   :  { %v457_v40 = vpop.f32.mrf.mxu0 }
  0xdc   :  { %v268_v41 = vadd.f32 %v391_v38, %v260_v39 }
  0xde   :  { %v269_v42 = vmax.f32 %v268_v41, 0.0 }
  0xe0   :  { %491 = vmatmul.mubr.f32.vlgmr.msra.gmra.mxu1 %v269_v42 }
 0x1a0   :  { %v359_v44 = vpop.f32.mrf.mxu1 }
 0x1a1   :  { %v360_v45 = vadd.f32 %v392_v43, %v359_v44 }
 0x1a2   :  { %v492_v46 = vpop.f32.mrf.mxu1 }
 0x1a3   :  { %363 = vst [vmem:[#allocation2] sm:$0xff] %v360_v45 }
 0x1a4   :  { %507 = shalt.err (!%p504_p4)
}
 0x1a5   :  { %373 = dma.vmem_to_hbm [thread:$0]  %s371_s7, 128, %s697_s5, [#allocation3]  }
 0x1a6   :  { %516 = dma.done.wait [#allocation3], 128  }
 0x1a7   :  { %517 = vsyncadd [#allocation3], 4294967168 }
 0x1a8   :  { %377 = vsyncpa [#allocation3], 1 }

</bundles_post_ra>
